<compile_context>
chip_gen: v5e
topology: v5e:2x2
jax: 0.10.0
libtpu: 0.0.40
codegen_flags: <defaults>
</compile_context>

<pallas_src>
import functools

import jax
import jax.numpy as jnp
from jax.experimental import pallas as pl
from jax.experimental.pallas import tpu as pltpu

_LANE = 128
_SUBLANE = 8


def _round_up(x, m):
    return ((x + m - 1) // m) * m


def _ae_kernel(x_ref,
               w1_ref, b1_ref,   # encoder layer 1: F      -> H
               w2_ref, b2_ref,   # encoder layer 2: H      -> L_pad
               w3_ref, b3_ref,   # decoder layer 1: L_pad  -> H
               w4_ref, b4_ref,   # decoder layer 2: H      -> F_pad
               z_ref, xhat_ref,
               *, compute_dtype):
    x = x_ref[...]                                          # (TB, F) compute_dtype

    # ---- encoder ----
    h1 = jnp.dot(x, w1_ref[...], preferred_element_type=jnp.float32) + b1_ref[...]
    h1 = jnp.maximum(h1, 0.0)                               # ReLU in f32 (VPU)
    z = jnp.dot(h1.astype(compute_dtype), w2_ref[...],
                preferred_element_type=jnp.float32) + b2_ref[...]
    z_ref[...] = z.astype(z_ref.dtype)                      # lane-dense 128-wide store

    # ---- decoder ----
    # Padded lanes of z are exactly zero and the matching rows of w3 are zero,
    # so running the decoder on the padded z is exact.
    h2 = jnp.dot(z.astype(compute_dtype), w3_ref[...],
                 preferred_element_type=jnp.float32) + b3_ref[...]
    h2 = jnp.maximum(h2, 0.0)                               # ReLU in f32
    x_hat = jnp.dot(h2.astype(compute_dtype), w4_ref[...],
                    preferred_element_type=jnp.float32) + b4_ref[...]
    xhat_ref[...] = x_hat.astype(xhat_ref.dtype)            # lane-dense 128-wide store


def autoencoder_forward(x, params, *, batch_tile=256, compute_dtype=jnp.bfloat16):
    """Fused AutoEncoder forward.

    x: (batch, num_features) f32.
    params: dict of (in, out)-shaped f32 weights w1..w4 and (1, out) biases b1..b4.
    Returns {"z": (batch, latent), "x_hat": (batch, num_features)} in f32.
    """
    batch, num_features = x.shape
    hidden = params["w1"].shape[1]
    latent = params["w2"].shape[1]

    lat_pad = _round_up(latent, _LANE)
    feat_pad = _round_up(num_features, _LANE)

    # ---- pack params: lane-pad output dims, cast matmul operands to bf16 ----
    w1 = params["w1"].astype(compute_dtype)                                   # (F, H)
    b1 = params["b1"].astype(jnp.float32)                                     # (1, H)
    w2 = jnp.zeros((hidden, lat_pad), compute_dtype
                   ).at[:, :latent].set(params["w2"].astype(compute_dtype))   # (H, Lp)
    b2 = jnp.zeros((1, lat_pad), jnp.float32
                   ).at[:, :latent].set(params["b2"].astype(jnp.float32))
    w3 = jnp.zeros((lat_pad, hidden), compute_dtype
                   ).at[:latent, :].set(params["w3"].astype(compute_dtype))   # (Lp, H)
    b3 = params["b3"].astype(jnp.float32)                                     # (1, H)
    w4 = jnp.zeros((hidden, feat_pad), compute_dtype
                   ).at[:, :num_features].set(params["w4"].astype(compute_dtype))  # (H, Fp)
    b4 = jnp.zeros((1, feat_pad), jnp.float32
                   ).at[:, :num_features].set(params["b4"].astype(jnp.float32))

    # ---- batch tiling: large multiple-of-8 tile, pad batch to a tile multiple ----
    tb = max(_SUBLANE,
             min(_round_up(batch_tile, _SUBLANE), _round_up(batch, _SUBLANE)))
    batch_pad = _round_up(batch, tb)
    xb = x.astype(compute_dtype)
    if batch_pad != batch:
        xb = jnp.pad(xb, ((0, batch_pad - batch), (0, 0)))
    grid = (batch_pad // tb,)

    batch_spec = lambda shape: pl.BlockSpec(shape, lambda i: (i, 0))
    resident = lambda arr: pl.BlockSpec(arr.shape, lambda i: (0, 0))  # DMA'd once

    # ---- scheduler hints ----
    bytes_of = lambda a: a.size * a.dtype.itemsize
    param_bytes = sum(bytes_of(a) for a in (w1, b1, w2, b2, w3, b3, w4, b4))
    flops = 2 * batch_pad * (num_features * hidden + hidden * lat_pad
                             + lat_pad * hidden + hidden * feat_pad)
    bytes_accessed = bytes_of(xb) + param_bytes + batch_pad * (lat_pad + feat_pad) * 4
    cost = pl.CostEstimate(flops=flops, transcendentals=0,
                           bytes_accessed=bytes_accessed)

    # VMEM budget: double-buffered x / z / x_hat tiles + resident params
    # (+2x headroom); keep within v7x's 64 MiB physical VMEM.
    c_itemsize = jnp.dtype(compute_dtype).itemsize
    vmem_est = (2 * tb * num_features * c_itemsize
                + 2 * tb * (lat_pad + feat_pad) * 4
                + param_bytes)
    vmem_limit = int(min(max(2 * vmem_est, 32 * 1024 * 1024), 64 * 1024 * 1024))

    z_pad, xhat_pad = pl.pallas_call(
        functools.partial(_ae_kernel, compute_dtype=compute_dtype),
        grid=grid,
        out_shape=(
            jax.ShapeDtypeStruct((batch_pad, lat_pad), jnp.float32),
            jax.ShapeDtypeStruct((batch_pad, feat_pad), jnp.float32),
        ),
        in_specs=[
            batch_spec((tb, num_features)),
            resident(w1), resident(b1),
            resident(w2), resident(b2),
            resident(w3), resident(b3),
            resident(w4), resident(b4),
        ],
        out_specs=(
            batch_spec((tb, lat_pad)),
            batch_spec((tb, feat_pad)),
        ),
        compiler_params=pltpu.CompilerParams(
            dimension_semantics=("parallel",),   # v7x megacore shards the batch axis
            vmem_limit_bytes=vmem_limit,
        ),
        cost_estimate=cost,
    )(xb, w1, b1, w2, b2, w3, b3, w4, b4)

    return {"z": z_pad[:batch, :latent],
            "x_hat": xhat_pad[:batch, :num_features]}


def init_params(key, num_features, hidden_units, latent_features):
    """PyTorch nn.Linear-style init (uniform +/- 1/sqrt(fan_in)).

    Weights stored pre-transposed to (in, out); biases as (1, out)."""
    def linear(key, fan_in, fan_out):
        kw, kb = jax.random.split(key)
        bound = 1.0 / jnp.sqrt(jnp.float32(fan_in))
        w = jax.random.uniform(kw, (fan_in, fan_out), jnp.float32, -bound, bound)
        b = jax.random.uniform(kb, (1, fan_out), jnp.float32, -bound, bound)
        return w, b

    k1, k2, k3, k4 = jax.random.split(key, 4)
    w1, b1 = linear(k1, num_features, hidden_units)      # encoder[0]
    w2, b2 = linear(k2, hidden_units, latent_features)   # encoder[2]
    w3, b3 = linear(k3, latent_features, hidden_units)   # decoder[0]
    w4, b4 = linear(k4, hidden_units, num_features)      # decoder[2]
    return {"w1": w1, "b1": b1, "w2": w2, "b2": b2,
            "w3": w3, "b3": b3, "w4": w4, "b4": b4}


if __name__ == "__main__":
    # Small shapes consistent with the module: AutoEncoder(hidden_units=32,
    # num_features=16, latent_features=2), batch of 8 samples.
    batch = 8
    num_features = 16
    hidden_units = 32
    latent_features = 2

    key = jax.random.PRNGKey(0)
    kx, kp = jax.random.split(key)
    x = jax.random.normal(kx, (batch, num_features), dtype=jnp.float32)
    params = init_params(kp, num_features, hidden_units, latent_features)

    out = autoencoder_forward(x, params)
    jax.block_until_ready(out)

    # Pure-f32 JAX reference (same math as the PyTorch module).
    h1 = jnp.maximum(x @ params["w1"] + params["b1"], 0.0)
    z_ref = h1 @ params["w2"] + params["b2"]
    h2 = jnp.maximum(z_ref @ params["w3"] + params["b3"], 0.0)
    xhat_ref = h2 @ params["w4"] + params["b4"]

    assert out["z"].shape == (batch, latent_features)
    assert out["x_hat"].shape == (batch, num_features)
    assert bool(jnp.all(jnp.isfinite(out["z"]))) and bool(jnp.all(jnp.isfinite(out["x_hat"])))
    # bf16 matmul operands / f32 accumulation -> loose tolerance vs pure-f32 ref.
    assert jnp.allclose(out["z"], z_ref, atol=3e-2, rtol=3e-2), "z mismatch"
    assert jnp.allclose(out["x_hat"], xhat_ref, atol=3e-2, rtol=3e-2), "x_hat mismatch"

    print("KERNEL_OK")
</pallas_src>

<mosaic_0001>
module attributes {stable_mosaic.version = 11 : i64} {
  func.func @_ae_kernel(%arg0: i32, %arg1: memref<8x16xbf16, #tpu.memory_space<vmem>>, %arg2: memref<16x32xbf16, #tpu.memory_space<vmem>>, %arg3: memref<1x32xf32, #tpu.memory_space<vmem>>, %arg4: memref<32x128xbf16, #tpu.memory_space<vmem>>, %arg5: memref<1x128xf32, #tpu.memory_space<vmem>>, %arg6: memref<128x32xbf16, #tpu.memory_space<vmem>>, %arg7: memref<1x32xf32, #tpu.memory_space<vmem>>, %arg8: memref<32x128xbf16, #tpu.memory_space<vmem>>, %arg9: memref<1x128xf32, #tpu.memory_space<vmem>>, %arg10: memref<8x128xf32, #tpu.memory_space<vmem>>, %arg11: memref<8x128xf32, #tpu.memory_space<vmem>>) attributes {dimension_semantics = [#tpu.dimension_semantics<parallel>], iteration_bounds = array<i64: 1>, scalar_prefetch = 0 : i64, scratch_operands = 0 : i64, tpu.core_type = #tpu.core_type<tc>, window_params = [{transform_indices = @transform_0, window_bounds = array<i64: 8, 16>}, {pipeline_mode = #tpu.pipeline_mode<synchronous>, transform_indices = @transform_1, window_bounds = array<i64: 16, 32>}, {pipeline_mode = #tpu.pipeline_mode<synchronous>, transform_indices = @transform_2, window_bounds = array<i64: 1, 32>}, {pipeline_mode = #tpu.pipeline_mode<synchronous>, transform_indices = @transform_3, window_bounds = array<i64: 32, 128>}, {pipeline_mode = #tpu.pipeline_mode<synchronous>, transform_indices = @transform_4, window_bounds = array<i64: 1, 128>}, {pipeline_mode = #tpu.pipeline_mode<synchronous>, transform_indices = @transform_5, window_bounds = array<i64: 128, 32>}, {pipeline_mode = #tpu.pipeline_mode<synchronous>, transform_indices = @transform_6, window_bounds = array<i64: 1, 32>}, {pipeline_mode = #tpu.pipeline_mode<synchronous>, transform_indices = @transform_7, window_bounds = array<i64: 32, 128>}, {pipeline_mode = #tpu.pipeline_mode<synchronous>, transform_indices = @transform_8, window_bounds = array<i64: 1, 128>}, {transform_indices = @transform_9, window_bounds = array<i64: 8, 128>}, {transform_indices = @transform_10, window_bounds = array<i64: 8, 128>}]} {
    %c0 = arith.constant 0 : index
    %c0_0 = arith.constant 0 : index
    %0 = vector.load %arg1[%c0, %c0_0] : memref<8x16xbf16, #tpu.memory_space<vmem>>, vector<8x16xbf16>
    %c0_1 = arith.constant 0 : index
    %c0_2 = arith.constant 0 : index
    %1 = vector.load %arg2[%c0_1, %c0_2] : memref<16x32xbf16, #tpu.memory_space<vmem>>, vector<16x32xbf16>
    %cst = arith.constant dense<0.000000e+00> : vector<8x32xf32>
    %2 = tpu.matmul %0, %1, %cst {dimension_numbers = #tpu.dot_dimension_numbers<[1], [0], [0], [1], [0, 0, 1, 1], [], []>} : vector<8x16xbf16>, vector<16x32xbf16>, vector<8x32xf32> -> vector<8x32xf32>
    %c0_3 = arith.constant 0 : index
    %c0_4 = arith.constant 0 : index
    %3 = vector.load %arg3[%c0_3, %c0_4] : memref<1x32xf32, #tpu.memory_space<vmem>>, vector<1x32xf32>
    %4 = vector.broadcast %3 : vector<1x32xf32> to vector<8x32xf32>
    %5 = arith.addf %2, %4 : vector<8x32xf32>
    %cst_5 = arith.constant 0.000000e+00 : f32
    %6 = vector.broadcast %cst_5 : f32 to vector<8x32xf32>
    %7 = arith.maximumf %5, %6 : vector<8x32xf32>
    %8 = arith.truncf %7 : vector<8x32xf32> to vector<8x32xbf16>
    %c0_6 = arith.constant 0 : index
    %c0_7 = arith.constant 0 : index
    %9 = vector.load %arg4[%c0_6, %c0_7] : memref<32x128xbf16, #tpu.memory_space<vmem>>, vector<32x128xbf16>
    %cst_8 = arith.constant dense<0.000000e+00> : vector<8x128xf32>
    %10 = tpu.matmul %8, %9, %cst_8 {dimension_numbers = #tpu.dot_dimension_numbers<[1], [0], [0], [1], [0, 0, 1, 1], [], []>} : vector<8x32xbf16>, vector<32x128xbf16>, vector<8x128xf32> -> vector<8x128xf32>
    %c0_9 = arith.constant 0 : index
    %c0_10 = arith.constant 0 : index
    %11 = vector.load %arg5[%c0_9, %c0_10] : memref<1x128xf32, #tpu.memory_space<vmem>>, vector<1x128xf32>
    %12 = vector.broadcast %11 : vector<1x128xf32> to vector<8x128xf32>
    %13 = arith.addf %10, %12 : vector<8x128xf32>
    %c0_11 = arith.constant 0 : index
    %c0_12 = arith.constant 0 : index
    %14 = vector.load %arg10[%c0_11, %c0_12] : memref<8x128xf32, #tpu.memory_space<vmem>>, vector<8x128xf32>
    tpu.vector_store %arg10[%c0_11, %c0_12], %13 {strides = array<i32>} : memref<8x128xf32, #tpu.memory_space<vmem>>, vector<8x128xf32>,
    %15 = arith.truncf %13 : vector<8x128xf32> to vector<8x128xbf16>
    %c0_13 = arith.constant 0 : index
    %c0_14 = arith.constant 0 : index
    %16 = vector.load %arg6[%c0_13, %c0_14] : memref<128x32xbf16, #tpu.memory_space<vmem>>, vector<128x32xbf16>
    %cst_15 = arith.constant dense<0.000000e+00> : vector<8x32xf32>
    %17 = tpu.matmul %15, %16, %cst_15 {dimension_numbers = #tpu.dot_dimension_numbers<[1], [0], [0], [1], [0, 0, 1, 1], [], []>} : vector<8x128xbf16>, vector<128x32xbf16>, vector<8x32xf32> -> vector<8x32xf32>
    %c0_16 = arith.constant 0 : index
    %c0_17 = arith.constant 0 : index
    %18 = vector.load %arg7[%c0_16, %c0_17] : memref<1x32xf32, #tpu.memory_space<vmem>>, vector<1x32xf32>
    %19 = vector.broadcast %18 : vector<1x32xf32> to vector<8x32xf32>
    %20 = arith.addf %17, %19 : vector<8x32xf32>
    %cst_18 = arith.constant 0.000000e+00 : f32
    %21 = vector.broadcast %cst_18 : f32 to vector<8x32xf32>
    %22 = arith.maximumf %20, %21 : vector<8x32xf32>
    %23 = arith.truncf %22 : vector<8x32xf32> to vector<8x32xbf16>
    %c0_19 = arith.constant 0 : index
    %c0_20 = arith.constant 0 : index
    %24 = vector.load %arg8[%c0_19, %c0_20] : memref<32x128xbf16, #tpu.memory_space<vmem>>, vector<32x128xbf16>
    %cst_21 = arith.constant dense<0.000000e+00> : vector<8x128xf32>
    %25 = tpu.matmul %23, %24, %cst_21 {dimension_numbers = #tpu.dot_dimension_numbers<[1], [0], [0], [1], [0, 0, 1, 1], [], []>} : vector<8x32xbf16>, vector<32x128xbf16>, vector<8x128xf32> -> vector<8x128xf32>
    %c0_22 = arith.constant 0 : index
    %c0_23 = arith.constant 0 : index
    %26 = vector.load %arg9[%c0_22, %c0_23] : memref<1x128xf32, #tpu.memory_space<vmem>>, vector<1x128xf32>
    %27 = vector.broadcast %26 : vector<1x128xf32> to vector<8x128xf32>
    %28 = arith.addf %25, %27 : vector<8x128xf32>
    %c0_24 = arith.constant 0 : index
    %c0_25 = arith.constant 0 : index
    %29 = vector.load %arg11[%c0_24, %c0_25] : memref<8x128xf32, #tpu.memory_space<vmem>>, vector<8x128xf32>
    tpu.vector_store %arg11[%c0_24, %c0_25], %28 {strides = array<i32>} : memref<8x128xf32, #tpu.memory_space<vmem>>, vector<8x128xf32>,
    return
  }
  func.func @transform_0(%arg0: i32) -> (i32, i32) {
    %c0_i32 = arith.constant 0 : i32
    %c0_i32_0 = arith.constant 0 : i32
    return %arg0, %c0_i32 : i32, i32
  }
  func.func @transform_1(%arg0: i32) -> (i32, i32) {
    %c0_i32 = arith.constant 0 : i32
    %c0_i32_0 = arith.constant 0 : i32
    %c0_i32_1 = arith.constant 0 : i32
    return %c0_i32, %c0_i32_0 : i32, i32
  }
  func.func @transform_2(%arg0: i32) -> (i32, i32) {
    %c0_i32 = arith.constant 0 : i32
    %c0_i32_0 = arith.constant 0 : i32
    %c0_i32_1 = arith.constant 0 : i32
    return %c0_i32, %c0_i32_0 : i32, i32
  }
  func.func @transform_3(%arg0: i32) -> (i32, i32) {
    %c0_i32 = arith.constant 0 : i32
    %c0_i32_0 = arith.constant 0 : i32
    %c0_i32_1 = arith.constant 0 : i32
    return %c0_i32, %c0_i32_0 : i32, i32
  }
  func.func @transform_4(%arg0: i32) -> (i32, i32) {
    %c0_i32 = arith.constant 0 : i32
    %c0_i32_0 = arith.constant 0 : i32
    %c0_i32_1 = arith.constant 0 : i32
    return %c0_i32, %c0_i32_0 : i32, i32
  }
  func.func @transform_5(%arg0: i32) -> (i32, i32) {
    %c0_i32 = arith.constant 0 : i32
    %c0_i32_0 = arith.constant 0 : i32
    %c0_i32_1 = arith.constant 0 : i32
    return %c0_i32, %c0_i32_0 : i32, i32
  }
  func.func @transform_6(%arg0: i32) -> (i32, i32) {
    %c0_i32 = arith.constant 0 : i32
    %c0_i32_0 = arith.constant 0 : i32
    %c0_i32_1 = arith.constant 0 : i32
    return %c0_i32, %c0_i32_0 : i32, i32
  }
  func.func @transform_7(%arg0: i32) -> (i32, i32) {
    %c0_i32 = arith.constant 0 : i32
    %c0_i32_0 = arith.constant 0 : i32
    %c0_i32_1 = arith.constant 0 : i32
    return %c0_i32, %c0_i32_0 : i32, i32
  }
  func.func @transform_8(%arg0: i32) -> (i32, i32) {
    %c0_i32 = arith.constant 0 : i32
    %c0_i32_0 = arith.constant 0 : i32
    %c0_i32_1 = arith.constant 0 : i32
    return %c0_i32, %c0_i32_0 : i32, i32
  }
  func.func @transform_9(%arg0: i32) -> (i32, i32) {
    %c0_i32 = arith.constant 0 : i32
    %c0_i32_0 = arith.constant 0 : i32
    return %arg0, %c0_i32 : i32, i32
  }
  func.func @transform_10(%arg0: i32) -> (i32, i32) {
    %c0_i32 = arith.constant 0 : i32
    %c0_i32_0 = arith.constant 0 : i32
    return %arg0, %c0_i32 : i32, i32
  }
}

</mosaic_0001>

<bundles_post_ra>
// kernel: tpu_custom_call.1
= control target key start
LH: loop header
LB: loop body
LE: loop exit
PB: predicated region body
PF: predicated region fallthrough
CT: control target
= control target key end

     0   :  { %16 = vsyncpa [#allocation3], 0  ;;  %vm50_vm0 = vcmask 130048   ;;  %s505_s0 = inlined_call_operand.vmem [shape: bf16[8,16], index: 0, kind: input, shape index: {}]   ;;  %s506_s1 = inlined_call_operand.vmem [shape: bf16[16,32], index: 1, kind: input, shape index: {}]   ;;  %s507_s2 = inlined_call_operand.vmem [shape: f32[1,32], index: 2, kind: input, shape index: {}]   ;;  %s508_s3 = inlined_call_operand.vmem [shape: bf16[32,128], index: 3, kind: input, shape index: {}]   ;;  %s509_s4 = inlined_call_operand.vmem [shape: f32[1,128], index: 4, kind: input, shape index: {}]   ;;  %s510_s5 = inlined_call_operand.vmem [shape: bf16[128,32], index: 5, kind: input, shape index: {}]   ;;  %s511_s6 = inlined_call_operand.vmem [shape: f32[1,32], index: 6, kind: input, shape index: {}]   ;;  %s512_s7 = inlined_call_operand.vmem [shape: bf16[32,128], index: 7, kind: input, shape index: {}]   ;;  %s513_s8 = inlined_call_operand.vmem [shape: f32[1,128], index: 8, kind: input, shape index: {}]   ;;  %s514_s9 = inlined_call_operand.hbm [shape: f32[8,128], index: 9, kind: output, shape index: {0}]   ;;  %s515_s10 = inlined_call_operand.hbm [shape: f32[8,128], index: 10, kind: output, shape index: {1}]  }
   0x1   :  { %v315_v0 = vld [vmem:[%s506_s1] sm:$0xff] }
   0x2   :  { %v37_v1 = vld [vmem:[%s505_s0] sm:$0xf]  ;;  %61 = vmatpush.bf16.msra.mxu0 %v315_v0 }
   0x3   :  { %17 = vsyncpa [#allocation5], 0  ;;  %v317_v2 = vld [vmem:[%s508_s3 + $0x8] sm:$0xff]  ;;  %v316_v3 = vld [vmem:[%s508_s3] sm:$0xff]  ;;  %vm89_vm1 = vcmask 261120   ;;  %s235_s23 = sshll.u32 %s514_s9, 4  ;;  %s236_s23 = int_to_ptr.hbm [resolvable:$true] %s235_s23 }
   0x4   :  { %99 = vmatpush.bf16.msra.mxu1 %v317_v2  ;;  %v325_v4 = vld [vmem:[%s510_s5 + $0x38] sm:$0xff]  ;;  %v324_v5 = vld [vmem:[%s510_s5 + $0x30] sm:$0xff]  ;;  %v323_v6 = vld [vmem:[%s510_s5 + $0x28] sm:$0xff]  ;;  %s246_s27 = sshll.u32 %s515_s10, 4  ;;  %s247_s27 = int_to_ptr.hbm [resolvable:$true] %s246_s27 }
   0x5   :  { %264 = vmatmul.msk.bf16.vlgmr.msra.gmra.mxu0 %vm50_vm0, %v37_v1  ;;  %176 = vmatpush.bf16.msra.mxu2 %v325_v4  ;;  %v322_v7 = vld [vmem:[%s510_s5 + $0x20] sm:$0xff]  ;;  %v321_v8 = vld [vmem:[%s510_s5 + $0x18] sm:$0xff]  ;;  %v320_v9 = vld [vmem:[%s510_s5 + $0x10] sm:$0xff] }
   0x6   :  { %v330_v10 = vld [vmem:[%s507_s2] ss:$0 sm:$0xff]  ;;  %v319_v11 = vld [vmem:[%s510_s5 + $0x8] sm:$0xff] }
   0x7   :  { %v318_v17 = vld [vmem:[%s510_s5] sm:$0xff]  ;;  %v327_v23 = vld [vmem:[%s512_s7 + $0x8] sm:$0xff] }
   0x8   :  { %100 = vmatpush.bf16.msra.mxu1 %v316_v3  ;;  %v331_v18 = vld [vmem:[%s509_s4] ss:$0 sm:$0xff]  ;;  %220 = vmatpush.bf16.msra.mxu3 %v327_v23  ;;  %s386_s4 = smov [#allocation2]  }
   0x9   :  { %177 = vmatpush.bf16.msra.mxu2 %v324_v5  ;;  %v326_v24 = vld [vmem:[%s512_s7] sm:$0xff]  ;;  %s233_s1 = sshll.u32 %s386_s4, 4  ;;  %s234_s1 = int_to_ptr.vmem [resolvable:$true] %s233_s1 }
   0xa   :  { %v332_v25 = vld [vmem:[%s511_s6] ss:$0 sm:$0xff]  ;;  %s387_s6 = smov [#allocation4]  }
   0xb   :  { %v333_v31 = vld [vmem:[%s513_s8] ss:$0 sm:$0xff]  ;;  %s244_s25 = sshll.u32 %s387_s6, 4  ;;  %s245_s25 = int_to_ptr.vmem [resolvable:$true] %s244_s25 }
   0xc   :  { %221 = vmatpush.bf16.msra.mxu3 %v326_v24 }
   0xd   :  { %178 = vmatpush.bf16.msra.mxu2 %v323_v6 }
  0x11   :  { %179 = vmatpush.bf16.msra.mxu2 %v322_v7 }
  0x15   :  { %180 = vmatpush.bf16.msra.mxu2 %v321_v8 }
  0x19   :  { %181 = vmatpush.bf16.msra.mxu2 %v320_v9 }
  0x1d   :  { %182 = vmatpush.bf16.msra.mxu2 %v319_v11 }
  0x21   :  { %183 = vmatpush.bf16.msra.mxu2 %v318_v17 }
  0x82   :  { %v63_v12 = vpop.f32.mrf.mxu0 }
  0x83   :  { %v64_v13 = vadd.f32 %v330_v10, %v63_v12 }
  0x85   :  { %v67_v14 = vmax.f32 %v64_v13, 0.0 }
  0x87   :  { %v68_v15 = vpack.c.bf16 %v67_v14, %v67_v14 }
  0x89   :  { %273 = vmatmul.msk.bf16.vlgmr.msra.gmra.mxu1 %vm89_vm1, %v68_v15 }
  0x8a   :  { %v65_v16 = vpop.f32.mrf.mxu0 }
 0x106   :  { %v102_v19 = vpop.f32.mrf.mxu1 }
 0x107   :  { %v103_v20 = vadd.f32 %v331_v18, %v102_v19 }
 0x109   :  { %106 = vst [vmem:[#allocation2] sm:$0xff] %v103_v20  ;;  %v107_v21 = vpack.c.bf16 %v103_v20, %v103_v20 }
 0x10a   :  { %238 = dma.vmem_to_hbm [thread:$0]  %s234_s1, 128, %s236_s23, [#allocation3]  }
 0x10b   :  { %184 = vmatmul.bf16.vlgmr.msra.gmra.mxu2 %v107_v21 }
 0x10e   :  { %v104_v22 = vpop.f32.mrf.mxu1 }
 0x18e   :  { %v185_v26 = vpop.f32.mrf.mxu2 }
 0x18f   :  { %v186_v27 = vadd.f32 %v332_v25, %v185_v26 }
 0x191   :  { %v189_v28 = vmax.f32 %v186_v27, 0.0 }
 0x193   :  { %v190_v29 = vpack.c.bf16 %v189_v28, %v189_v28 }
 0x195   :  { %314 = vmatmul.msk.bf16.vlgmr.msra.gmra.mxu3 %vm89_vm1, %v190_v29 }
 0x196   :  { %v187_v30 = vpop.f32.mrf.mxu2 }
 0x218   :  { %v223_v32 = vpop.f32.mrf.mxu3 }
 0x219   :  { %v224_v33 = vadd.f32 %v333_v31, %v223_v32 }
 0x21b   :  { %227 = vst [vmem:[#allocation4] sm:$0xff] %v224_v33 }
 0x21c   :  { %249 = dma.vmem_to_hbm [thread:$0]  %s245_s25, 128, %s247_s27, [#allocation5]  }
 0x220   :  { %v225_v34 = vpop.f32.mrf.mxu3 }
 0x221   :  { %382 = dma.done.wait [#allocation3], 128  }
 0x222   :  { %383 = vsyncadd [#allocation3], 4294967168 }
 0x223   :  { %384 = dma.done.wait [#allocation5], 128  }
 0x224   :  { %385 = vsyncadd [#allocation5], 4294967168 }
 0x225   :  { %258 = vsyncpa [#allocation3], 1 }
 0x226   :  { %259 = vsyncpa [#allocation5], 1 }

</bundles_post_ra>
